<compile_context>
chip_gen: v7x
topology: tpu7x:2x2x1
jax: 0.10.0
libtpu: 0.0.40
codegen_flags: <defaults>
</compile_context>

<pallas_src>
import jax
import jax.numpy as jnp
import numpy as np
from jax import lax
from jax.experimental import pallas as pl
from jax.experimental.pallas import tpu as pltpu

_BN_EPS = 1e-5


def _hardswish(v):
    # torch.nn.Hardswish: x * clamp(x + 3, 0, 6) / 6
    return v * jnp.clip(v + 3.0, 0.0, 6.0) * (1.0 / 6.0)


# ---------------------------------------------------------------------------
# Pallas kernel
# ---------------------------------------------------------------------------
def make_kernel(H, W, Cin, Cexp, Cout, ksize, has_shortcut):
    HW = H * W
    pad = ksize // 2

    def kernel(x_ref, wcat_ref, bcat_ref, wd_ref, b2_ref, w3_ref, b3_ref,
               mask_ref, o_ref):
        # ---- fused expand 1x1 (+ conv-BN shortcut): one bf16 MXU matmul ----
        x2 = x_ref[0]                                        # (Cin, HW) f32
        ycat = jnp.dot(wcat_ref[...], x2.astype(jnp.bfloat16),
                       preferred_element_type=jnp.float32)   # (Cexp[+Cout], HW)
        ycat = ycat + bcat_ref[...]                          # folded BN biases
        ye = _hardswish(ycat[:Cexp, :])                      # expand activations
        sc = ycat[Cexp:Cexp + Cout, :] if has_shortcut else x2  # residual path

        # ---- depthwise KxK (stride 1): lane-rotated MACs (XLU + VALU) ------
        acc = None
        for dy in range(ksize):
            for dx in range(ksize):
                t = dy * ksize + dx
                off = (dy - pad) * W + (dx - pad)
                # patch[c, i] = ye[c, (i + off) mod HW]; wrap is masked below.
                patch = ye if off == 0 else pltpu.roll(
                    ye, shift=(-off) % HW, axis=1)
                term = patch * wd_ref[:, t:t + 1]             # per-channel weight
                if off != 0:                                  # kill H/W wrap
                    term = term * mask_ref[t:t + 1, :]
                acc = term if acc is None else acc + term     # first tap inits
        y2 = _hardswish(acc + b2_ref[...])                    # (Cexp, HW)

        # ---- projection 1x1: bf16 MXU matmul + residual add -----------------
        z = jnp.dot(w3_ref[...], y2.astype(jnp.bfloat16),
                    preferred_element_type=jnp.float32)       # (Cout, HW)
        z = z + b3_ref[...] + sc
        o_ref[...] = z.reshape(1, Cout, HW).astype(o_ref.dtype)

    return kernel


# ---------------------------------------------------------------------------
# Wrapper
# ---------------------------------------------------------------------------
def bottleneck_v3(x_nchw, kparams, *, ksize, stride, has_shortcut):
    """x_nchw: (N, Cin, H, W) float32 -> (N, Cout, H, W) float32."""
    if stride != 1:
        # TODO(synk): stride > 1 subsampling of the lane-dense depthwise slab
        # is not implemented (would need a strided lane gather).
        raise NotImplementedError("only stride == 1 is implemented")
    N, Cin, H, W = x_nchw.shape
    (wcat, bcat, wd_t, b2c, w3f, b3c, masks) = kparams
    Cout, Cexp = w3f.shape
    if not has_shortcut:
        assert Cin == Cout, "identity residual requires Cin == Cout"
    HW = H * W

    kernel = make_kernel(H, W, Cin, Cexp, Cout, ksize, has_shortcut)
    x_flat = x_nchw.reshape(N, Cin, HW)      # free, contiguous reshape

    def const_spec(p):
        return pl.BlockSpec(p.shape, lambda n, _nd=p.ndim: (0,) * _nd)

    in_specs = ([pl.BlockSpec((1, Cin, HW), lambda n: (n, 0, 0))]
                + [const_spec(p) for p in kparams])
    out_specs = pl.BlockSpec((1, Cout, HW), lambda n: (n, 0, 0))

    out = pl.pallas_call(
        kernel,
        out_shape=jax.ShapeDtypeStruct((N, Cout, HW), x_nchw.dtype),
        grid=(N,),
        in_specs=in_specs,
        out_specs=out_specs,
        compiler_params=pltpu.CompilerParams(
            dimension_semantics=("parallel",)),
    )(x_flat, *kparams)
    return out.reshape(N, Cout, H, W)


# ---------------------------------------------------------------------------
# Parameter construction (raw PyTorch-style params + kernel-side folding)
# ---------------------------------------------------------------------------
def init_raw_params(key, Cin, Cexp, Cout, ksize, has_shortcut):
    ks = jax.random.split(key, 8)

    def bn_params(kk, C):
        k1, k2, k3, k4 = jax.random.split(kk, 4)
        gamma = jax.random.uniform(k1, (C,), jnp.float32, 0.5, 1.5)
        beta = 0.1 * jax.random.normal(k2, (C,), jnp.float32)
        mean = 0.1 * jax.random.normal(k3, (C,), jnp.float32)
        var = jax.random.uniform(k4, (C,), jnp.float32, 0.5, 1.5)
        return (gamma, beta, mean, var)

    w1 = 0.2 * jax.random.normal(ks[0], (Cexp, Cin), jnp.float32)
    bn1 = bn_params(ks[1], Cexp)
    wd = 0.2 * jax.random.normal(ks[2], (Cexp, ksize, ksize), jnp.float32)
    bn2 = bn_params(ks[3], Cexp)
    w3 = 0.2 * jax.random.normal(ks[4], (Cout, Cexp), jnp.float32)
    bn3 = bn_params(ks[5], Cout)
    if has_shortcut:
        wsc = 0.2 * jax.random.normal(ks[6], (Cout, Cin), jnp.float32)
        bnsc = bn_params(ks[7], Cout)
    else:
        wsc = jnp.zeros((Cout, Cin), jnp.float32)
        bnsc = (jnp.ones((Cout,)), jnp.zeros((Cout,)),
                jnp.zeros((Cout,)), jnp.ones((Cout,)))
    return (w1, bn1, wd, bn2, w3, bn3, wsc, bnsc)


def _fold_bn(p):
    g, b, m, v = p
    s = g / jnp.sqrt(v + _BN_EPS)
    return s, b - m * s


def prepare_kernel_params(raw, *, H, W, ksize, has_shortcut):
    (w1, bn1, wd, bn2, w3, bn3, wsc, bnsc) = raw
    Cexp = w1.shape[0]
    pad = ksize // 2
    s1, b1 = _fold_bn(bn1)
    s2, b2 = _fold_bn(bn2)
    s3, b3 = _fold_bn(bn3)

    w1f = w1 * s1[:, None]                                    # fold BN scale
    if has_shortcut:
        ssc, bsc = _fold_bn(bnsc)
        wcat = jnp.concatenate([w1f, wsc * ssc[:, None]],
                               axis=0).astype(jnp.bfloat16)   # (Cexp+Cout, Cin)
        bcat = jnp.concatenate([b1, bsc])[:, None]            # (Cexp+Cout, 1)
    else:
        wcat = w1f.astype(jnp.bfloat16)
        bcat = b1[:, None]
    wd_t = (wd.reshape(Cexp, ksize * ksize) * s2[:, None]).astype(jnp.float32)
    b2c = b2[:, None]
    w3f = (w3 * s3[:, None]).astype(jnp.bfloat16)             # (Cout, Cexp)
    b3c = b3[:, None]

    # Per-tap validity masks: kill both the H-axis wrap of the cyclic lane
    # roll and the W-axis wrap of the flattened spatial index.
    hidx = np.arange(H * W) // W
    widx = np.arange(H * W) % W
    masks = np.zeros((ksize * ksize, H * W), np.float32)
    for dy in range(ksize):
        for dx in range(ksize):
            t = dy * ksize + dx
            ok_h = (hidx + dy - pad >= 0) & (hidx + dy - pad < H)
            ok_w = (widx + dx - pad >= 0) & (widx + dx - pad < W)
            masks[t] = (ok_h & ok_w).astype(np.float32)
    masks = jnp.asarray(masks)

    return (wcat, bcat, wd_t, b2c, w3f, b3c, masks)


# ---------------------------------------------------------------------------
# Pure-JAX reference (NCHW, mirrors the PyTorch module in inference mode)
# ---------------------------------------------------------------------------
def reference(x, raw, *, ksize, stride, has_shortcut):
    (w1, bn1, wd, bn2, w3, bn3, wsc, bnsc) = raw
    pad = ksize // 2

    def bn(v, p):
        s, b = _fold_bn(p)
        return v * s[None, :, None, None] + b[None, :, None, None]

    y = jnp.einsum('nchw,ec->nehw', x, w1)
    y = _hardswish(bn(y, bn1))
    y = lax.conv_general_dilated(
        y, wd.reshape(wd.shape[0], 1, ksize, ksize),
        window_strides=(stride, stride),
        padding=((pad, pad), (pad, pad)),
        dimension_numbers=('NCHW', 'OIHW', 'NCHW'),
        feature_group_count=wd.shape[0])
    y = _hardswish(bn(y, bn2))
    z = bn(jnp.einsum('nchw,oc->nohw', y, w3), bn3)
    if stride == 1:
        sc = bn(jnp.einsum('nchw,oc->nohw', x, wsc), bnsc) if has_shortcut else x
        z = z + sc
    return z


if __name__ == "__main__":
    # TODO(synk): the `se` callable is not defined in the reference module;
    # these configs correspond to se=None (no squeeze-excite stage appended).
    configs = [
        # conv+BN shortcut path (stride==1, Cin != Cout)
        dict(N=2, H=16, W=16, Cin=8, Cexp=24, Cout=16, ksize=3, stride=1),
        # identity shortcut path (stride==1, Cin == Cout)
        dict(N=2, H=16, W=16, Cin=16, Cexp=32, Cout=16, ksize=3, stride=1),
    ]

    key = jax.random.PRNGKey(0)
    for cfg in configs:
        N, H, W = cfg["N"], cfg["H"], cfg["W"]
        Cin, Cexp, Cout = cfg["Cin"], cfg["Cexp"], cfg["Cout"]
        ksize, stride = cfg["ksize"], cfg["stride"]
        has_shortcut = (stride == 1 and Cin != Cout)

        key, kx, kp = jax.random.split(key, 3)
        x = jax.random.normal(kx, (N, Cin, H, W), jnp.float32)  # NCHW like PyTorch
        raw = init_raw_params(kp, Cin, Cexp, Cout, ksize, has_shortcut)
        kparams = prepare_kernel_params(raw, H=H, W=W, ksize=ksize,
                                        has_shortcut=has_shortcut)

        out = jax.block_until_ready(
            bottleneck_v3(x, kparams, ksize=ksize, stride=stride,
                          has_shortcut=has_shortcut))

        ref = reference(x, raw, ksize=ksize, stride=stride,
                        has_shortcut=has_shortcut)
        np.testing.assert_allclose(np.asarray(out), np.asarray(ref),
                                   rtol=2e-2, atol=2e-2)

    print("KERNEL_OK")
</pallas_src>

<mosaic_0001>
module attributes {stable_mosaic.version = 11 : i64} {
  func.func @kernel(%arg0: i32, %arg1: memref<1x8x256xf32, #tpu.memory_space<vmem>>, %arg2: memref<40x8xbf16, #tpu.memory_space<vmem>>, %arg3: memref<40x1xf32, #tpu.memory_space<vmem>>, %arg4: memref<24x9xf32, #tpu.memory_space<vmem>>, %arg5: memref<24x1xf32, #tpu.memory_space<vmem>>, %arg6: memref<16x24xbf16, #tpu.memory_space<vmem>>, %arg7: memref<16x1xf32, #tpu.memory_space<vmem>>, %arg8: memref<9x256xf32, #tpu.memory_space<vmem>>, %arg9: memref<1x16x256xf32, #tpu.memory_space<vmem>>) attributes {dimension_semantics = [#tpu.dimension_semantics<parallel>], iteration_bounds = array<i64: 2>, scalar_prefetch = 0 : i64, scratch_operands = 0 : i64, tpu.core_type = #tpu.core_type<tc>, window_params = [{transform_indices = @transform_0, window_bounds = array<i64: 1, 8, 256>}, {pipeline_mode = #tpu.pipeline_mode<synchronous>, transform_indices = @transform_1, window_bounds = array<i64: 40, 8>}, {pipeline_mode = #tpu.pipeline_mode<synchronous>, transform_indices = @transform_2, window_bounds = array<i64: 40, 1>}, {pipeline_mode = #tpu.pipeline_mode<synchronous>, transform_indices = @transform_3, window_bounds = array<i64: 24, 9>}, {pipeline_mode = #tpu.pipeline_mode<synchronous>, transform_indices = @transform_4, window_bounds = array<i64: 24, 1>}, {pipeline_mode = #tpu.pipeline_mode<synchronous>, transform_indices = @transform_5, window_bounds = array<i64: 16, 24>}, {pipeline_mode = #tpu.pipeline_mode<synchronous>, transform_indices = @transform_6, window_bounds = array<i64: 16, 1>}, {pipeline_mode = #tpu.pipeline_mode<synchronous>, transform_indices = @transform_7, window_bounds = array<i64: 9, 256>}, {transform_indices = @transform_8, window_bounds = array<i64: 1, 16, 256>}]} {
    %c0 = arith.constant 0 : index
    %c0_0 = arith.constant 0 : index
    %c0_1 = arith.constant 0 : index
    %0 = vector.load %arg1[%c0, %c0_0, %c0_1] : memref<1x8x256xf32, #tpu.memory_space<vmem>>, vector<1x8x256xf32>
    %1 = vector.shape_cast %0 : vector<1x8x256xf32> to vector<8x256xf32>
    %c0_2 = arith.constant 0 : index
    %c0_3 = arith.constant 0 : index
    %2 = vector.load %arg2[%c0_2, %c0_3] : memref<40x8xbf16, #tpu.memory_space<vmem>>, vector<40x8xbf16>
    %3 = arith.truncf %1 : vector<8x256xf32> to vector<8x256xbf16>
    %cst = arith.constant dense<0.000000e+00> : vector<40x256xf32>
    %4 = tpu.matmul %2, %3, %cst {dimension_numbers = #tpu.dot_dimension_numbers<[1], [0], [0], [1], [0, 0, 1, 1], [], []>} : vector<40x8xbf16>, vector<8x256xbf16>, vector<40x256xf32> -> vector<40x256xf32>
    %c0_4 = arith.constant 0 : index
    %c0_5 = arith.constant 0 : index
    %5 = vector.load %arg3[%c0_4, %c0_5] : memref<40x1xf32, #tpu.memory_space<vmem>>, vector<40x1xf32>
    %6 = vector.broadcast %5 : vector<40x1xf32> to vector<40x256xf32>
    %7 = arith.addf %4, %6 : vector<40x256xf32>
    %8 = vector.extract_strided_slice %7 {offsets = [0, 0], sizes = [24, 256], strides = [1, 1]} : vector<40x256xf32> to vector<24x256xf32>
    %cst_6 = arith.constant 3.000000e+00 : f32
    %9 = vector.broadcast %cst_6 : f32 to vector<24x256xf32>
    %10 = arith.addf %8, %9 : vector<24x256xf32>
    %cst_7 = arith.constant 0.000000e+00 : f32
    %cst_8 = arith.constant 6.000000e+00 : f32
    %11 = vector.broadcast %cst_7 : f32 to vector<24x256xf32>
    %12 = arith.maximumf %11, %10 : vector<24x256xf32>
    %13 = vector.broadcast %cst_8 : f32 to vector<24x256xf32>
    %14 = arith.minimumf %13, %12 : vector<24x256xf32>
    %15 = arith.mulf %8, %14 : vector<24x256xf32>
    %cst_9 = arith.constant 0.166666672 : f32
    %16 = vector.broadcast %cst_9 : f32 to vector<24x256xf32>
    %17 = arith.mulf %15, %16 : vector<24x256xf32>
    %18 = vector.extract_strided_slice %7 {offsets = [24, 0], sizes = [16, 256], strides = [1, 1]} : vector<40x256xf32> to vector<16x256xf32>
    %c17_i32 = arith.constant 17 : i32
    %19 = tpu.dynamic_rotate %17 by %c17_i32 dim 1 : vector<24x256xf32>, i32 -> vector<24x256xf32>
    %c0_10 = arith.constant 0 : index
    %c0_11 = arith.constant 0 : index
    %20 = vector.load %arg4[%c0_10, %c0_11] : memref<24x9xf32, #tpu.memory_space<vmem>>, vector<24x1xf32>
    %21 = vector.broadcast %20 : vector<24x1xf32> to vector<24x256xf32>
    %22 = arith.mulf %19, %21 : vector<24x256xf32>
    %c0_12 = arith.constant 0 : index
    %c0_13 = arith.constant 0 : index
    %23 = vector.load %arg8[%c0_12, %c0_13] : memref<9x256xf32, #tpu.memory_space<vmem>>, vector<1x256xf32>
    %24 = vector.broadcast %23 : vector<1x256xf32> to vector<24x256xf32>
    %25 = arith.mulf %22, %24 : vector<24x256xf32>
    %c16_i32 = arith.constant 16 : i32
    %26 = tpu.dynamic_rotate %17 by %c16_i32 dim 1 : vector<24x256xf32>, i32 -> vector<24x256xf32>
    %c0_14 = arith.constant 0 : index
    %c1 = arith.constant 1 : index
    %27 = vector.load %arg4[%c0_14, %c1] : memref<24x9xf32, #tpu.memory_space<vmem>>, vector<24x1xf32>
    %28 = vector.broadcast %27 : vector<24x1xf32> to vector<24x256xf32>
    %29 = arith.mulf %26, %28 : vector<24x256xf32>
    %c1_15 = arith.constant 1 : index
    %c0_16 = arith.constant 0 : index
    %30 = vector.load %arg8[%c1_15, %c0_16] : memref<9x256xf32, #tpu.memory_space<vmem>>, vector<1x256xf32>
    %31 = vector.broadcast %30 : vector<1x256xf32> to vector<24x256xf32>
    %32 = arith.mulf %29, %31 : vector<24x256xf32>
    %33 = arith.addf %25, %32 : vector<24x256xf32>
    %c15_i32 = arith.constant 15 : i32
    %34 = tpu.dynamic_rotate %17 by %c15_i32 dim 1 : vector<24x256xf32>, i32 -> vector<24x256xf32>
    %c0_17 = arith.constant 0 : index
    %c2 = arith.constant 2 : index
    %35 = vector.load %arg4[%c0_17, %c2] : memref<24x9xf32, #tpu.memory_space<vmem>>, vector<24x1xf32>
    %36 = vector.broadcast %35 : vector<24x1xf32> to vector<24x256xf32>
    %37 = arith.mulf %34, %36 : vector<24x256xf32>
    %c2_18 = arith.constant 2 : index
    %c0_19 = arith.constant 0 : index
    %38 = vector.load %arg8[%c2_18, %c0_19] : memref<9x256xf32, #tpu.memory_space<vmem>>, vector<1x256xf32>
    %39 = vector.broadcast %38 : vector<1x256xf32> to vector<24x256xf32>
    %40 = arith.mulf %37, %39 : vector<24x256xf32>
    %41 = arith.addf %33, %40 : vector<24x256xf32>
    %c1_i32 = arith.constant 1 : i32
    %42 = tpu.dynamic_rotate %17 by %c1_i32 dim 1 : vector<24x256xf32>, i32 -> vector<24x256xf32>
    %c0_20 = arith.constant 0 : index
    %c3 = arith.constant 3 : index
    %43 = vector.load %arg4[%c0_20, %c3] : memref<24x9xf32, #tpu.memory_space<vmem>>, vector<24x1xf32>
    %44 = vector.broadcast %43 : vector<24x1xf32> to vector<24x256xf32>
    %45 = arith.mulf %42, %44 : vector<24x256xf32>
    %c3_21 = arith.constant 3 : index
    %c0_22 = arith.constant 0 : index
    %46 = vector.load %arg8[%c3_21, %c0_22] : memref<9x256xf32, #tpu.memory_space<vmem>>, vector<1x256xf32>
    %47 = vector.broadcast %46 : vector<1x256xf32> to vector<24x256xf32>
    %48 = arith.mulf %45, %47 : vector<24x256xf32>
    %49 = arith.addf %41, %48 : vector<24x256xf32>
    %c0_23 = arith.constant 0 : index
    %c4 = arith.constant 4 : index
    %50 = vector.load %arg4[%c0_23, %c4] : memref<24x9xf32, #tpu.memory_space<vmem>>, vector<24x1xf32>
    %51 = vector.broadcast %50 : vector<24x1xf32> to vector<24x256xf32>
    %52 = arith.mulf %17, %51 : vector<24x256xf32>
    %53 = arith.addf %49, %52 : vector<24x256xf32>
    %c255_i32 = arith.constant 255 : i32
    %54 = tpu.dynamic_rotate %17 by %c255_i32 dim 1 : vector<24x256xf32>, i32 -> vector<24x256xf32>
    %c0_24 = arith.constant 0 : index
    %c5 = arith.constant 5 : index
    %55 = vector.load %arg4[%c0_24, %c5] : memref<24x9xf32, #tpu.memory_space<vmem>>, vector<24x1xf32>
    %56 = vector.broadcast %55 : vector<24x1xf32> to vector<24x256xf32>
    %57 = arith.mulf %54, %56 : vector<24x256xf32>
    %c5_25 = arith.constant 5 : index
    %c0_26 = arith.constant 0 : index
    %58 = vector.load %arg8[%c5_25, %c0_26] : memref<9x256xf32, #tpu.memory_space<vmem>>, vector<1x256xf32>
    %59 = vector.broadcast %58 : vector<1x256xf32> to vector<24x256xf32>
    %60 = arith.mulf %57, %59 : vector<24x256xf32>
    %61 = arith.addf %53, %60 : vector<24x256xf32>
    %c241_i32 = arith.constant 241 : i32
    %62 = tpu.dynamic_rotate %17 by %c241_i32 dim 1 : vector<24x256xf32>, i32 -> vector<24x256xf32>
    %c0_27 = arith.constant 0 : index
    %c6 = arith.constant 6 : index
    %63 = vector.load %arg4[%c0_27, %c6] : memref<24x9xf32, #tpu.memory_space<vmem>>, vector<24x1xf32>
    %64 = vector.broadcast %63 : vector<24x1xf32> to vector<24x256xf32>
    %65 = arith.mulf %62, %64 : vector<24x256xf32>
    %c6_28 = arith.constant 6 : index
    %c0_29 = arith.constant 0 : index
    %66 = vector.load %arg8[%c6_28, %c0_29] : memref<9x256xf32, #tpu.memory_space<vmem>>, vector<1x256xf32>
    %67 = vector.broadcast %66 : vector<1x256xf32> to vector<24x256xf32>
    %68 = arith.mulf %65, %67 : vector<24x256xf32>
    %69 = arith.addf %61, %68 : vector<24x256xf32>
    %c240_i32 = arith.constant 240 : i32
    %70 = tpu.dynamic_rotate %17 by %c240_i32 dim 1 : vector<24x256xf32>, i32 -> vector<24x256xf32>
    %c0_30 = arith.constant 0 : index
    %c7 = arith.constant 7 : index
    %71 = vector.load %arg4[%c0_30, %c7] : memref<24x9xf32, #tpu.memory_space<vmem>>, vector<24x1xf32>
    %72 = vector.broadcast %71 : vector<24x1xf32> to vector<24x256xf32>
    %73 = arith.mulf %70, %72 : vector<24x256xf32>
    %c7_31 = arith.constant 7 : index
    %c0_32 = arith.constant 0 : index
    %74 = vector.load %arg8[%c7_31, %c0_32] : memref<9x256xf32, #tpu.memory_space<vmem>>, vector<1x256xf32>
    %75 = vector.broadcast %74 : vector<1x256xf32> to vector<24x256xf32>
    %76 = arith.mulf %73, %75 : vector<24x256xf32>
    %77 = arith.addf %69, %76 : vector<24x256xf32>
    %c239_i32 = arith.constant 239 : i32
    %78 = tpu.dynamic_rotate %17 by %c239_i32 dim 1 : vector<24x256xf32>, i32 -> vector<24x256xf32>
    %c0_33 = arith.constant 0 : index
    %c8 = arith.constant 8 : index
    %79 = vector.load %arg4[%c0_33, %c8] : memref<24x9xf32, #tpu.memory_space<vmem>>, vector<24x1xf32>
    %80 = vector.broadcast %79 : vector<24x1xf32> to vector<24x256xf32>
    %81 = arith.mulf %78, %80 : vector<24x256xf32>
    %c8_34 = arith.constant 8 : index
    %c0_35 = arith.constant 0 : index
    %82 = vector.load %arg8[%c8_34, %c0_35] : memref<9x256xf32, #tpu.memory_space<vmem>>, vector<1x256xf32>
    %83 = vector.broadcast %82 : vector<1x256xf32> to vector<24x256xf32>
    %84 = arith.mulf %81, %83 : vector<24x256xf32>
    %85 = arith.addf %77, %84 : vector<24x256xf32>
    %c0_36 = arith.constant 0 : index
    %c0_37 = arith.constant 0 : index
    %86 = vector.load %arg5[%c0_36, %c0_37] : memref<24x1xf32, #tpu.memory_space<vmem>>, vector<24x1xf32>
    %87 = vector.broadcast %86 : vector<24x1xf32> to vector<24x256xf32>
    %88 = arith.addf %85, %87 : vector<24x256xf32>
    %cst_38 = arith.constant 3.000000e+00 : f32
    %89 = vector.broadcast %cst_38 : f32 to vector<24x256xf32>
    %90 = arith.addf %88, %89 : vector<24x256xf32>
    %cst_39 = arith.constant 0.000000e+00 : f32
    %cst_40 = arith.constant 6.000000e+00 : f32
    %91 = vector.broadcast %cst_39 : f32 to vector<24x256xf32>
    %92 = arith.maximumf %91, %90 : vector<24x256xf32>
    %93 = vector.broadcast %cst_40 : f32 to vector<24x256xf32>
    %94 = arith.minimumf %93, %92 : vector<24x256xf32>
    %95 = arith.mulf %88, %94 : vector<24x256xf32>
    %cst_41 = arith.constant 0.166666672 : f32
    %96 = vector.broadcast %cst_41 : f32 to vector<24x256xf32>
    %97 = arith.mulf %95, %96 : vector<24x256xf32>
    %c0_42 = arith.constant 0 : index
    %c0_43 = arith.constant 0 : index
    %98 = vector.load %arg6[%c0_42, %c0_43] : memref<16x24xbf16, #tpu.memory_space<vmem>>, vector<16x24xbf16>
    %99 = arith.truncf %97 : vector<24x256xf32> to vector<24x256xbf16>
    %cst_44 = arith.constant dense<0.000000e+00> : vector<16x256xf32>
    %100 = tpu.matmul %98, %99, %cst_44 {dimension_numbers = #tpu.dot_dimension_numbers<[1], [0], [0], [1], [0, 0, 1, 1], [], []>} : vector<16x24xbf16>, vector<24x256xbf16>, vector<16x256xf32> -> vector<16x256xf32>
    %c0_45 = arith.constant 0 : index
    %c0_46 = arith.constant 0 : index
    %101 = vector.load %arg7[%c0_45, %c0_46] : memref<16x1xf32, #tpu.memory_space<vmem>>, vector<16x1xf32>
    %102 = vector.broadcast %101 : vector<16x1xf32> to vector<16x256xf32>
    %103 = arith.addf %100, %102 : vector<16x256xf32>
    %104 = arith.addf %103, %18 : vector<16x256xf32>
    %105 = vector.shape_cast %104 : vector<16x256xf32> to vector<1x16x256xf32>
    %c0_47 = arith.constant 0 : index
    %c0_48 = arith.constant 0 : index
    %c0_49 = arith.constant 0 : index
    %106 = vector.load %arg9[%c0_47, %c0_48, %c0_49] : memref<1x16x256xf32, #tpu.memory_space<vmem>>, vector<1x16x256xf32>
    tpu.vector_store %arg9[%c0_47, %c0_48, %c0_49], %105 {strides = array<i32>} : memref<1x16x256xf32, #tpu.memory_space<vmem>>, vector<1x16x256xf32>,
    return
  }
  func.func @transform_0(%arg0: i32) -> (i32, i32, i32) {
    %c0_i32 = arith.constant 0 : i32
    %c0_i32_0 = arith.constant 0 : i32
    %c0_i32_1 = arith.constant 0 : i32
    return %arg0, %c0_i32, %c0_i32_0 : i32, i32, i32
  }
  func.func @transform_1(%arg0: i32) -> (i32, i32) {
    %c0_i32 = arith.constant 0 : i32
    %c0_i32_0 = arith.constant 0 : i32
    %c0_i32_1 = arith.constant 0 : i32
    return %c0_i32, %c0_i32_0 : i32, i32
  }
  func.func @transform_2(%arg0: i32) -> (i32, i32) {
    %c0_i32 = arith.constant 0 : i32
    %c0_i32_0 = arith.constant 0 : i32
    %c0_i32_1 = arith.constant 0 : i32
    return %c0_i32, %c0_i32_0 : i32, i32
  }
  func.func @transform_3(%arg0: i32) -> (i32, i32) {
    %c0_i32 = arith.constant 0 : i32
    %c0_i32_0 = arith.constant 0 : i32
    %c0_i32_1 = arith.constant 0 : i32
    return %c0_i32, %c0_i32_0 : i32, i32
  }
  func.func @transform_4(%arg0: i32) -> (i32, i32) {
    %c0_i32 = arith.constant 0 : i32
    %c0_i32_0 = arith.constant 0 : i32
    %c0_i32_1 = arith.constant 0 : i32
    return %c0_i32, %c0_i32_0 : i32, i32
  }
  func.func @transform_5(%arg0: i32) -> (i32, i32) {
    %c0_i32 = arith.constant 0 : i32
    %c0_i32_0 = arith.constant 0 : i32
    %c0_i32_1 = arith.constant 0 : i32
    return %c0_i32, %c0_i32_0 : i32, i32
  }
  func.func @transform_6(%arg0: i32) -> (i32, i32) {
    %c0_i32 = arith.constant 0 : i32
    %c0_i32_0 = arith.constant 0 : i32
    %c0_i32_1 = arith.constant 0 : i32
    return %c0_i32, %c0_i32_0 : i32, i32
  }
  func.func @transform_7(%arg0: i32) -> (i32, i32) {
    %c0_i32 = arith.constant 0 : i32
    %c0_i32_0 = arith.constant 0 : i32
    %c0_i32_1 = arith.constant 0 : i32
    return %c0_i32, %c0_i32_0 : i32, i32
  }
  func.func @transform_8(%arg0: i32) -> (i32, i32, i32) {
    %c0_i32 = arith.constant 0 : i32
    %c0_i32_0 = arith.constant 0 : i32
    %c0_i32_1 = arith.constant 0 : i32
    return %arg0, %c0_i32, %c0_i32_0 : i32, i32, i32
  }
}

</mosaic_0001>

<bundles_post_ra>
// kernel: tpu_custom_call.1
= control target key start
LH: loop header
LB: loop body
LE: loop exit
PB: predicated region body
PF: predicated region fallthrough
CT: control target
= control target key end

     0   :  { %13 = vsyncpa [#allocation3], 0  ;;  %s2184_s0 = inlined_call_operand.vmem [shape: f32[2,8,256], index: 0, kind: input, shape index: {}]   ;;  %s2185_s1 = inlined_call_operand.vmem [shape: bf16[40,8], index: 1, kind: input, shape index: {}]   ;;  %s2186_s2 = inlined_call_operand.vmem [shape: f32[40,1], index: 2, kind: input, shape index: {}]   ;;  %s2187_s3 = inlined_call_operand.vmem [shape: f32[24,9], index: 3, kind: input, shape index: {}]   ;;  %s2188_s4 = inlined_call_operand.vmem [shape: f32[24,1], index: 4, kind: input, shape index: {}]   ;;  %s2189_s5 = inlined_call_operand.vmem [shape: bf16[16,24], index: 5, kind: input, shape index: {}]   ;;  %s2190_s6 = inlined_call_operand.vmem [shape: f32[16,1], index: 6, kind: input, shape index: {}]   ;;  %s2191_s7 = inlined_call_operand.vmem [shape: f32[9,256], index: 7, kind: input, shape index: {}]   ;;  %s2192_s8 = inlined_call_operand.hbm [shape: f32[2,16,256], index: 8, kind: output, shape index: {}]  }
   0x1   :  { %15 = vsyncpa [#allocation3 + $0x1], 0  ;;  %s1444_s27 = smov 0   ;;  %s1446_s28 = smov 0  }
   0x2   :  { %s1448_s29 = smov 0   ;;  %s1450_s30 = smov 0  }
   0x3 LB: > { %s1465_s9 = sadd.s32 4294967295, %s1378_s30   ;;  %s1200_s10 = sadd.s32 4294967294, %s1378_s30   ;;  %s1378_s30 = sphi %s1450_s30, %s2263_s30   ;;  %s1374_s29 = sphi %s1448_s29, %s2262_s29   ;;  %s1370_s28 = sphi %s1446_s28, %s2261_s28   ;;  %s1366_s27 = sphi %s1444_s27, %s2260_s27  }
   0x4   : > { %s1469_s11 = sadd.s32 1, %s1378_s30   ;;  %s201_s12 = sadd.s32 1, %s1374_s29 }
   0x5   : > { %s198_s13 = ssub.s32 %s1378_s30, %s1469_s11  ;;  %p211_p0 = scmp.ne.s32.totalorder %s1374_s29, %s1370_s28 }
   0x6   : > { %p199_p1 = scmp.eq.s32.totalorder %s198_s13, 0  ;;  %p212_p2 = scmp.eq.s32.totalorder %s1465_s9, 1 }
   0x7   : > { %p217_p3 = scmp.ne.s32.totalorder %s1370_s28, %s1366_s27  ;;  %p218_p4 = scmp.eq.s32.totalorder %s1200_s10, 1 }
   0x8   : > { %s1480_s14 = scalar_select %p199_p1, %s1374_s29, %s201_s12  }
   0x9   : > { %p1482_p5 = por %p212_p2, %p211_p0  ;;  %p1486_p6 = por %p218_p4, %p217_p3 }
   0xa   : > { %p1203_p7 = scmp.ge.s32.totalorder %s1378_s30, 1  ;;  %p265_p8 = scmp.lt.s32.totalorder %s1378_s30, 3 }
   0xc   : > { %p266_p9 = pnand %p1203_p7, %p265_p8 }
   0xe   : > { %269 = sbr.rel (%p266_p9) target bundleno = 769 (0x301), region = 52 }
  0x15   : > { %p299_p10 = scmp.lt.s32.totalorder %s1465_s9, 1  ;;  %v1380_v0 = vmov 0   ;;  %v316_v1 = vld [vmem:[%s2186_s2 + $0x10] sm:$0xff]  ;;  %v314_v2 = vld [vmem:[%s2186_s2] sm:$0xff]  ;;  %v315_v4 = vld [vmem:[%s2186_s2 + $0x8] sm:$0xff]  ;;  %vm367_vm0 = vcmask 1043456  }
  0x16   : > { %406 = vmatprep.mubr.bf16.mxu0 %v1380_v0  ;;  %1291 = vset.pattern.permute.xlu1 %v1380_v0  ;;  %v1507_v3 = vld [vmem:[%s2187_s3] sm:$0xff]  ;;  %vm357_vm1 = vcmask 64512   ;;  %v1381_v11 = vmov 1   ;;  %v487_v12 = vld [vmem:[%s2187_s3 + $0x8] sm:$0xff]  ;;  %v1382_v13 = vmov 2   ;;  %v488_v15 = vld [vmem:[%s2187_s3 + $0x10] sm:$0xff] }
  0x17   : > { %s300_s17 = scalar_select %p299_p10, %s1465_s9, 1  ;;  %1290 = vset.pattern.permute.xlu0 %v1380_v0  ;;  %426 = vmatprep.mubr.bf16.mxu1 %v1380_v0  ;;  %v1312_v10 = vld [vmem:[%s2185_s1] sm:$0xff]   ;;  %v1313_v14 = vld [vmem:[%s2185_s1 + $0x8] sm:$0xff]   ;;  %v1383_v16 = vmov 3   ;;  %v1384_v17 = vmov 5   ;;  %v1385_v18 = vmov 4  }
  0x18   : > { %331 = vperm.xlu1 %1291, %v316_v1   ;;  %321 = vperm.xlu0 %1290, %v314_v2   ;;  %v1386_v19 = vmov 6   ;;  %v1387_v20 = vmov 7   ;;  %v1388_v21 = vmov 8   ;;  %v1314_v22 = vld [vmem:[%s2185_s1 + $0x10] ss:$0 sps:$4 sm:$0xff]   ;;  %s1389_s10 = smov 16  }
  0x19   : > { %s1229_s22 = sshll.u32 %s300_s17, 4  ;;  %s1390_s12 = smov 17   ;;  %vm1063_vm10 = vcmask 195584  }
  0x1a   : > { %s303_s13 = scalar_lea.vmem %s2184_s0, %s1229_s22  ;;  %s1392_s17 = smov 15  }
  0x1b   : > { %v306_v5 = vld [vmem:[%s303_s13 + $0x8] sm:$0xff]  ;;  %v305_v6 = vld [vmem:[%s303_s13] sm:$0xff]  ;;  %s1391_s13 = smov 127   ;;  %s1393_s18 = smov 113  }
  0x1c   : > { %v313_v7 = vpack.c.bf16 %v306_v5, %v306_v5  ;;  %v312_v8 = vpack.c.bf16 %v305_v6, %v305_v6  ;;  %491 = vperm.xlu1 %1291, %v1507_v3   ;;  %326 = vperm.xlu0 %1290, %v315_v4   ;;  %s1394_s19 = smov 1   ;;  %s1395_s20 = smov 112  }
  0x1d   : > { %s1396_s21 = smov 111   ;;  %s1397_s22 = smov [#allocation2]  }
  0x1e   : > { %1210 = vmatprep.subr.msk.bf16.mxu0 %vm367_vm0, %v313_v7  ;;  %v369_v9 = vsel %vm367_vm0, %v312_v8, 0  ;;  %1231 = vmatprep.subr.msk.bf16.mxu1 %vm367_vm0, %v313_v7 }
  0x1f   : > { %375 = vmatpush1.bf16.msra.mxu0 %v369_v9  ;;  %1232 = vmatpush1.bf16.msra.mxu1 %v369_v9 }
  0x20   : > { %1292 = vset.pattern.permute.xlu1 %v1381_v11  ;;  %1293 = vset.pattern.permute.xlu0 %v1381_v11 }
  0x21   : > { %548 = vperm.xlu1 %1292, %v1507_v3   ;;  %552 = vperm.xlu0 %1293, %v487_v12  }
  0x22   : > { %1211 = vmatmul.mubr.msk.bf16.vlgmr.msra.gmra.mrb[0].mxu0 %vm357_vm1, %v1312_v10  ;;  %1213 = vmatmul.mubr.msk.bf16.vlgmr.msra.gmra.mrb[0].mxu1 %vm357_vm1, %v1314_v22 }
  0x23   : > { %416 = vmatprep.mubr.bf16.mxu0 %v1380_v0  ;;  %1105 = vmatprep.mubr.bf16.mxu1 %v1380_v0 }
  0x25   : > { %1294 = vset.pattern.permute.xlu1 %v1382_v13  ;;  %1297 = vset.pattern.permute.xlu0 %v1382_v13 }
  0x26   : > { %610 = vperm.xlu1 %1294, %v1507_v3   ;;  %618 = vperm.xlu0 %1297, %v488_v15  }
  0x2a   : > { %1212 = vmatmul.mubr.msk.bf16.gmra.mrb[4].mxu0 %vm357_vm1, %v1313_v14  ;;  %614 = vperm.xlu1 %1294, %v487_v12  }
  0x2b   : > { %1298 = vset.pattern.permute.xlu0 %v1383_v16 }
  0x2c   : > { %676 = vperm.xlu0 %1298, %v487_v12  }
  0x2e   : > { %1295 = vset.pattern.permute.xlu1 %v1381_v11 }
  0x2f   : > { %556 = vperm.xlu1 %1295, %v488_v15  }
  0x30   : > { %680 = vperm.xlu0 %1298, %v488_v15  }
  0x33   : > { %1296 = vset.pattern.permute.xlu1 %v1383_v16 }
  0x34   : > { %672 = vperm.xlu1 %1296, %v1507_v3   ;;  %1300 = vset.pattern.permute.xlu0 %v1384_v17 }
  0x35   : > { %758 = vperm.xlu0 %1300, %v1507_v3  }
  0x38   : > { %1299 = vset.pattern.permute.xlu1 %v1385_v18 }
  0x39   : > { %715 = vperm.xlu1 %1299, %v1507_v3   ;;  %1303 = vset.pattern.permute.xlu0 %v1385_v18 }
  0x3a   : > { %723 = vperm.xlu0 %1303, %v488_v15  }
  0x3d   : > { %719 = vperm.xlu1 %1299, %v487_v12  }
  0x3e   : > { %1304 = vset.pattern.permute.xlu0 %v1386_v19 }
  0x3f   : > { %824 = vperm.xlu0 %1304, %v487_v12  }
  0x41   : > { %1301 = vset.pattern.permute.xlu1 %v1384_v17 }
  0x42   : > { %762 = vperm.xlu1 %1301, %v487_v12  }
  0x43   : > { %828 = vperm.xlu0 %1304, %v488_v15  }
  0x46   : > { %1302 = vset.pattern.permute.xlu1 %v1386_v19 }
  0x47   : > { %820 = vperm.xlu1 %1302, %v1507_v3   ;;  %1307 = vset.pattern.permute.xlu0 %v1387_v20 }
  0x48   : > { %886 = vperm.xlu0 %1307, %v487_v12  }
  0x4b   : > { %1305 = vset.pattern.permute.xlu1 %v1384_v17  ;;  %v986_v17 = vld [vmem:[%s2188_s4] sm:$0xff] }
  0x4c   : > { %766 = vperm.xlu1 %1305, %v488_v15   ;;  %890 = vperm.xlu0 %1307, %v488_v15  }
  0x50   : > { %1306 = vset.pattern.permute.xlu1 %v1387_v20  ;;  %1309 = vset.pattern.permute.xlu0 %v1388_v21 }
  0x51   : > { %882 = vperm.xlu1 %1306, %v1507_v3   ;;  %952 = vperm.xlu0 %1309, %v488_v15  }
  0x55   : > { %1308 = vset.pattern.permute.xlu1 %v1388_v21  ;;  %1310 = vset.pattern.permute.xlu0 %v1380_v0 }
  0x56   : > { %944 = vperm.xlu1 %1308, %v1507_v3   ;;  %496 = vperm.xlu0 %1310, %v487_v12  }
  0x5a   : > { %948 = vperm.xlu1 %1308, %v487_v12   ;;  %501 = vperm.xlu0 %1310, %v488_v15  }
  0x5e   : > { %1311 = vset.pattern.permute.xlu1 %v1380_v0 }
  0x97   : > { %v1549_v23 = vpop.permute.xlu1 %331  ;;  %v322_v29 = vpop.permute.xlu0 %321 }
  0x9b   : > { %v1551_v24 = vpop.permute.xlu1 %491  ;;  %v327_v34 = vpop.permute.xlu0 %326 }
  0xa0   : > { %v1553_v25 = vpop.permute.xlu1 %548  ;;  %v1613_v5 = vpop.permute.xlu0 %552 }
  0xa5   : > { %v1555_v26 = vpop.permute.xlu1 %610  ;;  %v1623_v9 = vpop.permute.xlu0 %618 }
  0xa6   : > { %2217 = vst [vmem:[#allocation8_spill] sm:$0xff] %v1623_v9  ;;  %v1219_v9 = vld [vmem:[%s2191_s7 + $0x7] ss:$8 sm:$0x3] }
  0xa9   : > { %v1557_v27 = vpop.permute.xlu1 %614 }
  0xab   : > { %v1632_v13 = vpop.permute.xlu0 %676 }
  0xae   : > { %v1559_v28 = vpop.permute.xlu1 %556 }
  0xaf   : > { %2214 = vst [vmem:[#allocation5_spill] sm:$0xff] %v1559_v28  ;;  %v1638_v15 = vpop.permute.xlu0 %680 }
  0xb0   : > { %2219 = vst [vmem:[#allocation10_spill] sm:$0xff] %v1638_v15 }
  0xb3   : > { %v1561_v31 = vpop.permute.xlu1 %672 }
  0xb4   : > { %v1651_v19 = vpop.permute.xlu0 %758 }
  0xb8   : > { %v1563_v42 = vpop.permute.xlu1 %715 }
  0xb9   : > { %v1657_v21 = vpop.permute.xlu0 %723 }
  0xba   : > { %2221 = vst [vmem:[#allocation12_spill] sm:$0xff] %v1657_v21 }
  0xbc   : > { %v1571_v55 = vpop.permute.xlu1 %719 }
  0xbe   : > { %v1667_v22 = vpop.permute.xlu0 %824 }
  0xf5   : > { %v408_v30 = vpop.f32.mrb[0].mxu0 }
  0xf6   : > { %v409_v32 = vadd.f32 %v408_v30, %v322_v29  ;;  %v410_v33 = vpop.f32.mrb[1].mxu0  ;;  %v1677_v30 = vpop.permute.xlu1 %762 }
  0xf7   : > { %v412_v35 = vpop.f32.mrb[2].mxu0  ;;  %v411_v37 = vadd.f32 %v410_v33, %v322_v29  ;;  %v1046_v29 = vld [vmem:[%s2190_s6] sm:$0xff] }
  0xf8   : > { %v435_v36 = vadd.f32 3.0, %v409_v32  ;;  %v413_v38 = vadd.f32 %v412_v35, %v327_v34  ;;  %v414_v39 = vpop.f32.mrb[3].mxu0 }
  0xf9   : > { %v436_v44 = vadd.f32 3.0, %v411_v37  ;;  %v415_v61 = vadd.f32 %v414_v39, %v327_v34 }
  0xfa   : > { %v441_v40 = vmax.f32 %v435_v36, 0.0  ;;  %v437_v41 = vadd.f32 3.0, %v413_v38  ;;  %v1685_v33 = vpop.permute.xlu1 %820 }
  0xfb   : > { %v442_v52 = vmax.f32 %v436_v44, 0.0  ;;  %v438_v62 = vadd.f32 3.0, %v415_v61 }
  0xfc   : > { %v447_v43 = vmin.f32 %v441_v40, 6.0  ;;  %v443_v45 = vmax.f32 %v437_v41, 0.0 }
  0xfd   : > { %v418_v46 = vpop.f32.mrb[4].mxu0  ;;  %v448_v57 = vmin.f32 %v442_v52, 6.0  ;;  %v444_v0 = vmax.f32 %v438_v62, 0.0 }
  0xfe   : > { %v453_v47 = vmul.f32 %v447_v43, %v409_v32  ;;  %v449_v48 = vmin.f32 %v443_v45, 6.0  ;;  %v420_v49 = vpop.f32.mrb[5].mxu0  ;;  %v419_v10 = vadd.f32 %v418_v46, %v1549_v23  ;;  %v1679_v32 = vpop.permute.xlu0 %828 }
  0xff   : > { %v1565_v50 = vpop.f32.mrb[6].mxu0  ;;  %v454_v59 = vmul.f32 %v448_v57, %v411_v37  ;;  %v421_v63 = vadd.f32 %v420_v49, %v1549_v23  ;;  %v450_v2 = vmin.f32 %v444_v0, 6.0  ;;  %v317_v23 = vld [vmem:[%s2186_s2 + $0x18] sm:$0xff]  ;;  %2222 = vst [vmem:[#allocation13_spill] sm:$0xff] %v1679_v32  ;;  %v1691_v35 = vpop.permute.xlu1 %766  ;;  %v987_v37 = vld [vmem:[%s2188_s4 + $0x8] sm:$0xff] }
 0x100   : > { %2215 = vst [vmem:[#allocation6_spill] sm:$0xff] %v1565_v50  ;;  %v1567_v51 = vmul.f32 0.16666667, %v453_v47  ;;  %v455_v53 = vmul.f32 %v449_v48, %v413_v38  ;;  %v1569_v54 = vpop.f32.mrb[7].mxu0  ;;  %v439_v12 = vadd.f32 3.0, %v419_v10  ;;  %2223 = vst [vmem:[#allocation14_spill] sm:$0xff] %v1691_v35  ;;  %v477_v47 = vlaneseq }
 0x101   : > { %2216 = vst [vmem:[#allocation7_spill] sm:$0xff] %v1569_v54  ;;  %v1588_v60 = vmul.f32 0.16666667, %v454_v59  ;;  %v440_v1 = vadd.f32 3.0, %v421_v63  ;;  %v456_v4 = vmul.f32 %v450_v2, %v415_v61  ;;  %v318_v59 = vld [vmem:[%s2186_s2 + $0x20] sm:$0xff] }
 0x102   : > { %v461_v56 = vmul.f32 0.16666667, %v455_v53  ;;  %528 = vrot.lane.b32.xlu0 %v1567_v51, %s1389_s10  ;;  %465 = vrot.lane.b32.xlu1 %v1567_v51, %s1390_s12  ;;  %v445_v14 = vmax.f32 %v439_v12, 0.0  ;;  %v1687_v34 = vpop.permute.xlu0 %886  ;;  %v1726_v52 = vand.u32 127, %v477_v47  ;;  %v988_v53 = vld [vmem:[%s2188_s4 + $0x10] sm:$0xff]  ;;  %v513_v12 = vshrl.u32 %v477_v47, 7 }
 0x103   : > { %v446_v3 = vmax.f32 %v440_v1, 0.0  ;;  %v1618_v7 = vmul.f32 0.16666667, %v456_v4  ;;  %v1700_v38 = vpop.permute.xlu1 %882  ;;  %v1743_v1 = vpop.f32.mrb[0].mxu1 }
 0x104   : > { %v1578_v58 = vmul.f32 %v1571_v55, %v461_v56  ;;  %v451_v16 = vmin.f32 %v445_v14, 6.0  ;;  %vm664_vm2 = vcmp.lt.s32.totalorder %v1726_v52, 1  ;;  %2227 = vst [vmem:[#allocation18_spill] sm:$0xff] %v1743_v1  ;;  %v1745_v2 = vpop.f32.mrb[1].mxu1  ;;  %vm479_vm3 = vcmp.lt.s32.totalorder %v1726_v52, 17 }
 0x105   : > { %v452_v6 = vmin.f32 %v446_v3, 6.0  ;;  %2228 = vst [vmem:[#allocation19_spill] sm:$0xff] %v1745_v2  ;;  %v1047_v3 = vld [vmem:[%s2190_s6 + $0x8] sm:$0xff]  ;;  %v432_v4 = vpop.f32.mrb[2].mxu1  ;;  %vm540_vm4 = vcmp.lt.s32.totalorder %v1726_v52, 16  ;;  %vm602_vm5 = vcmp.lt.s32.totalorder %v1726_v52, 15 }
 0x106   : > { %738 = vrot.lane.b32.xlu0 %v1567_v51, %s1391_s13  ;;  %590 = vrot.lane.b32.xlu1 %v1567_v51, %s1392_s17  ;;  %v457_v18 = vmul.f32 %v451_v16, %v419_v10  ;;  %v1693_v36 = vpop.permute.xlu0 %890  ;;  %v433_v10 = vpop.f32.mrb[3].mxu1  ;;  %vm750_vm6 = vcmp.lt.s32.totalorder %v1726_v52, 127  ;;  %vm812_vm7 = vcmp.lt.s32.totalorder %v1726_v52, 113  ;;  %vm874_vm8 = vcmp.lt.s32.totalorder %v1726_v52, 112 }
 0x107   : > { %v458_v8 = vmul.f32 %v452_v6, %v421_v63  ;;  %2224 = vst [vmem:[#allocation15_spill] sm:$0xff] %v1693_v36  ;;  %v1706_v40 = vpop.permute.xlu1 %944  ;;  %vm936_vm9 = vcmp.lt.s32.totalorder %v1726_v52, 111 }
 0x108   : > { %v1655_v20 = vmul.f32 0.16666667, %v457_v18  ;;  %v1214_v18 = vld [vmem:[%s2191_s7 + $0x1] ss:$8 sm:$0x3] }
 0x109   : > { %v1626_v11 = vmul.f32 0.16666667, %v458_v8 }
 0x10a   : > { %800 = vrot.lane.b32.xlu0 %v1567_v51, %s1393_s18  ;;  %652 = vrot.lane.b32.xlu1 %v1567_v51, %s1394_s19  ;;  %2220 = vst [vmem:[#allocation11_spill] sm:$0xff] %v1655_v20  ;;  %v1702_v39 = vpop.permute.xlu0 %952 }
 0x10b   : > { %2218 = vst [vmem:[#allocation9_spill] sm:$0xff] %v1626_v11  ;;  %2225 = vst [vmem:[#allocation16_spill] sm:$0xff] %v1702_v39  ;;  %v1714_v43 = vpop.permute.xlu1 %948 }
 0x10e   : > { %862 = vrot.lane.b32.xlu0 %v1567_v51, %s1395_s20  ;;  %658 = vrot.lane.b32.xlu1 %v1588_v60, %s1394_s19  ;;  %v1708_v41 = vpop.permute.xlu0 %496 }
 0x112   : > { %924 = vrot.lane.b32.xlu0 %v1567_v51, %s1396_s21  ;;  %467 = vrot.lane.b32.xlu1 %v461_v56, %s1390_s12  ;;  %v1716_v44 = vpop.permute.xlu0 %501 }
 0x113   : > { %2226 = vst [vmem:[#allocation17_spill] sm:$0xff] %v1716_v44 }
 0x116   : > { %471 = vrot.lane.b32.xlu0 %v1588_v60, %s1390_s12  ;;  %530 = vrot.lane.b32.xlu1 %v461_v56, %s1389_s10 }
 0x11a   : > { %534 = vrot.lane.b32.xlu0 %v1588_v60, %s1389_s10  ;;  %592 = vrot.lane.b32.xlu1 %v461_v56, %s1392_s17 }
 0x11e   : > { %596 = vrot.lane.b32.xlu0 %v1588_v60, %s1392_s17  ;;  %740 = vrot.lane.b32.xlu1 %v461_v56, %s1391_s13 }
 0x122   : > { %744 = vrot.lane.b32.xlu0 %v1588_v60, %s1391_s13  ;;  %802 = vrot.lane.b32.xlu1 %v461_v56, %s1393_s18 }
 0x126   : > { %806 = vrot.lane.b32.xlu0 %v1588_v60, %s1393_s18  ;;  %864 = vrot.lane.b32.xlu1 %v461_v56, %s1395_s20 }
 0x12a   : > { %868 = vrot.lane.b32.xlu0 %v1588_v60, %s1395_s20  ;;  %926 = vrot.lane.b32.xlu1 %v461_v56, %s1396_s21 }
 0x12e   : > { %654 = vrot.lane.b32.xlu0 %v461_v56, %s1394_s19  ;;  %473 = vrot.lane.b32.xlu1 %v1618_v7, %s1390_s12 }
 0x132   : > { %660 = vrot.lane.b32.xlu0 %v1618_v7, %s1394_s19  ;;  %536 = vrot.lane.b32.xlu1 %v1618_v7, %s1389_s10 }
 0x136   : > { %475 = vrot.lane.b32.xlu0 %v1626_v11, %s1390_s12  ;;  %598 = vrot.lane.b32.xlu1 %v1618_v7, %s1392_s17 }
 0x13a   : > { %538 = vrot.lane.b32.xlu0 %v1626_v11, %s1389_s10  ;;  %746 = vrot.lane.b32.xlu1 %v1618_v7, %s1391_s13 }
 0x13e   : > { %930 = vrot.lane.b32.xlu0 %v1588_v60, %s1396_s21  ;;  %808 = vrot.lane.b32.xlu1 %v1618_v7, %s1393_s18 }
 0x142   : > { %991 = vperm.xlu0 %1310, %v986_v17   ;;  %870 = vrot.lane.b32.xlu1 %v1618_v7, %s1395_s20  ;;  %v510_v17 = vld [vmem:[%s2191_s7] ss:$8 sm:$0x3] }
 0x146   : > { %872 = vrot.lane.b32.xlu0 %v1626_v11, %s1395_s20  ;;  %469 = vrot.lane.b32.xlu1 %v1655_v20, %s1390_s12  ;;  %s1320_s12 = sshll.u32 %s1397_s22, 4  ;;  %s1321_s12 = int_to_ptr.vmem [resolvable:$false] %s1320_s12 }
 0x147   : > { %s1322_s23 = scalar_lea.vmem %s1321_s12, 1024 }
 0x14a   : > { %934 = vrot.lane.b32.xlu0 %v1626_v11, %s1396_s21  ;;  %532 = vrot.lane.b32.xlu1 %v1655_v20, %s1389_s10 }
 0x14e   : > { %336 = vperm.xlu0 %1310, %v317_v23   ;;  %594 = vrot.lane.b32.xlu1 %v1655_v20, %s1392_s17  ;;  %v1763_v23 = vsub.s32 0, %v513_v12 }
 0x152   : > { %1050 = vperm.xlu0 %1310, %v1046_v29   ;;  %656 = vrot.lane.b32.xlu1 %v1655_v20, %s1394_s19  ;;  %v1765_v29 = vsub.s32 1, %v513_v12 }
 0x154   : > { %v1787_v10 = vrot.slane %v510_v17, %v1765_v29 }
 0x156   : > { %742 = vrot.lane.b32.xlu1 %v1655_v20, %s1391_s13 }
 0x15a   : > { %804 = vrot.lane.b32.xlu1 %v1655_v20, %s1393_s18 }
 0x15e   : > { %932 = vrot.lane.b32.xlu1 %v1618_v7, %s1396_s21 }
 0x162   : > { %996 = vperm.xlu1 %1311, %v987_v37  }
 0x166   : > { %866 = vrot.lane.b32.xlu1 %v1655_v20, %s1395_s20 }
 0x16a   : > { %928 = vrot.lane.b32.xlu1 %v1655_v20, %s1396_s21 }
 0x16e   : > { %600 = vrot.lane.b32.xlu1 %v1626_v11, %s1392_s17  ;;  %s296_s17 = sand.u32 1, %s1370_s28  }
 0x16f   : > { %s1204_s20 = sshll.u32 %s296_s17, 5 }
 0x172   : > { %662 = vrot.lane.b32.xlu1 %v1626_v11, %s1394_s19 }
 0x174   : > { %v529_v45 = vpop.permute.xlu0 %528  ;;  %v466_v46 = vpop.permute.xlu1 %465 }
 0x176   : > { %748 = vrot.lane.b32.xlu1 %v1626_v11, %s1391_s13  ;;  %s298_s13 = scalar_lea.vmem [#allocation2], %s1204_s20 }
 0x177   : > { %s1138_s19 = sshll.u32 %s298_s13, 4  ;;  %s2133_s19 = int_to_ptr.vmem [resolvable:$true] %s1138_s19 }
 0x178   : > { %v1722_v48 = vpop.permute.xlu0 %738  ;;  %v591_v49 = vpop.permute.xlu1 %590  ;;  %s1316_s26 = scalar_lea.vmem %s2133_s19, 512  ;;  %p1323_p0 = scmp.lt.s32.totalorder %s2133_s19, %s1321_s12 }
 0x179   : > { %p1317_p11 = scmp.ne.s32.totalorder %s2133_s19, %s1316_s26  ;;  %p1324_p1 = scmp.lt.s32.totalorder %s1322_s23, %s1316_s26 }
 0x17a   : > { %810 = vrot.lane.b32.xlu1 %v1626_v11, %s1393_s18  ;;  %s1230_s18 = sshll.u32 %s1465_s9, 9  ;;  %s2142_s9 = scalar_lea.sflag [#allocation3], %s296_s17 }
 0x17b   : > { %s2138_s25 = scalar_lea.hbm %s2192_s8, %s1230_s18  ;;  %p1318_p12 = pnand %p1317_p11, %p1482_p5 }
 0x17c   : > { %v1731_v56 = vpop.permute.xlu0 %800  ;;  %v653_v57 = vpop.permute.xlu1 %652  ;;  %p1325_p2 = por %p1324_p1, %p1323_p0 }
 0x17d   : > { %p1319_p13 = pneg %p1318_p12 }
 0x17e   : > { %1001 = vperm.xlu1 %1311, %v988_v53   ;;  %v1216_v53 = vld [vmem:[%s2191_s7 + $0x3] ss:$8 sm:$0x3] }
 0x17f   : > { %v1802_v54 = vrot.slane %v1216_v53, %v1763_v23  ;;  %v1805_v50 = vrot.slane %v1216_v53, %v1765_v29  ;;  %p1326_p3 = pnand %p1325_p2, %p1319_p13 }
 0x180   : > { %v1737_v61 = vpop.permute.xlu0 %862  ;;  %v659_v62 = vpop.permute.xlu1 %658 }
 0x181   : > { %v665_v63 = vsel %vm664_vm2, %v653_v57, %v659_v62  ;;  %v668_v0 = vsel %vm664_vm2, %v659_v62, %v653_v57  ;;  %v1776_v57 = vrot.slane %v510_v17, %v1763_v23  ;;  %v1782_v62 = vrot.slane %v1214_v18, %v1765_v29 }
 0x182   : > { %341 = vperm.xlu1 %1311, %v318_v59   ;;  %v1779_v59 = vrot.slane %v1214_v18, %v1763_v23 }
 0x183   : > { %2229 = vst [vmem:[#allocation20_spill] sm:$0xff] %v1782_v62 }
 0x184   : > { %v1750_v6 = vpop.permute.xlu0 %924  ;;  %v1752_v8 = vpop.permute.xlu1 %467 }
 0x186   : > { %1055 = vperm.xlu1 %1311, %v1047_v3  }
 0x188   : > { %v472_v14 = vpop.permute.xlu0 %471  ;;  %v1755_v16 = vpop.permute.xlu1 %530 }
 0x189   : > { %v480_v37 = vsel %vm479_vm3, %v466_v46, %v472_v14  ;;  %v483_v47 = vsel %vm479_vm3, %v472_v14, %v466_v46  ;;  %v1215_v14 = vld [vmem:[%s2191_s7 + $0x2] ss:$8 sm:$0x3] }
 0x18a   : > { %v504_v18 = vmul.f32 %v1551_v24, %v483_v47  ;;  %v505_v2 = vmul.f32 %v1551_v24, %v480_v37  ;;  %v1810_v39 = vrot.slane %v1215_v14, %v1763_v23  ;;  %v1813_v47 = vrot.slane %v1215_v14, %v1765_v29 }
 0x18c   : > { %v535_v3 = vpop.permute.xlu0 %534  ;;  %v1784_v4 = vpop.permute.xlu1 %592  ;;  %2230 = vst [vmem:[#allocation21_spill] sm:$0xff] %v1810_v39  ;;  %2231 = vst [vmem:[#allocation22_spill] sm:$0xff] %v1813_v47 }
 0x18d   : > { %v541_v46 = vsel %vm540_vm4, %v529_v45, %v535_v3  ;;  %v544_v12 = vsel %vm540_vm4, %v535_v3, %v529_v45 }
 0x18e   : > { %v559_v1 = vmul.f32 %v1553_v25, %v544_v12  ;;  %v560_v17 = vmul.f32 %v1553_v25, %v541_v46  ;;  %v683_v25 = vmul.f32 %v1561_v31, %v668_v0  ;;  %v684_v46 = vmul.f32 %v1561_v31, %v665_v63 }
 0x18f   : > { %v522_v12 = vmul.f32 %v1776_v57, %v504_v18 }
 0x190   : > { %v578_v45 = vmul.f32 %v1779_v59, %v559_v1  ;;  %v579_v3 = vmul.f32 %v1782_v62, %v560_v17  ;;  %v597_v24 = vpop.permute.xlu0 %596  ;;  %v1815_v37 = vpop.permute.xlu1 %740  ;;  %v523_v17 = vmul.f32 %v1787_v10, %v505_v2  ;;  %v702_v11 = vmul.f32 %v1802_v54, %v683_v25 }
 0x191   : > { %v603_v53 = vsel %vm602_vm5, %v591_v49, %v597_v24  ;;  %v606_v1 = vsel %vm602_vm5, %v597_v24, %v591_v49  ;;  %v703_v49 = vmul.f32 %v1805_v50, %v684_v46  ;;  %v726_v2 = vmul.f32 %v1563_v42, %v1567_v51 }
 0x192   : > { %v621_v14 = vmul.f32 %v1555_v26, %v606_v1  ;;  %v622_v32 = vmul.f32 %v1555_v26, %v603_v53  ;;  %v584_v36 = vadd.f32 %v578_v45, %v522_v12  ;;  %v585_v35 = vadd.f32 %v579_v3, %v523_v17 }
 0x193   : > { %v727_v26 = vmul.f32 %v1563_v42, %v1588_v60 }
 0x194   : > { %v640_v0 = vmul.f32 %v1810_v39, %v621_v14  ;;  %v641_v31 = vmul.f32 %v1813_v47, %v622_v32  ;;  %v1829_v63 = vpop.permute.xlu1 %802  ;;  %v745_v25 = vpop.permute.xlu0 %744 }
 0x196   : > { %v646_v24 = vadd.f32 %v640_v0, %v584_v36  ;;  %v647_v18 = vadd.f32 %v641_v31, %v585_v35 }
 0x198   : > { %v708_v45 = vadd.f32 %v702_v11, %v646_v24  ;;  %v709_v3 = vadd.f32 %v703_v49, %v647_v18  ;;  %v1837_v53 = vpop.permute.xlu1 %864  ;;  %v807_v36 = vpop.permute.xlu0 %806  ;;  %v1217_v24 = vld [vmem:[%s2191_s7 + $0x5] ss:$8 sm:$0x3] }
 0x199   : > { %v1880_v15 = vrot.slane %v1217_v24, %v1765_v29 }
 0x19a   : > { %v1839_v1 = vadd.f32 %v726_v2, %v708_v45  ;;  %v1841_v32 = vadd.f32 %v727_v26, %v709_v3  ;;  %v1218_v26 = vld [vmem:[%s2191_s7 + $0x6] ss:$8 sm:$0x3]  ;;  %v1871_v3 = vrot.slane %v1217_v24, %v1763_v23  ;;  %v751_v24 = vsel %vm750_vm6, %v1722_v48, %v745_v25 }
 0x19c   : > { %v1843_v12 = vpop.permute.xlu1 %926  ;;  %v869_v14 = vpop.permute.xlu0 %868 }
 0x1a0   : > { %v474_v46 = vpop.permute.xlu1 %473  ;;  %v655_v0 = vpop.permute.xlu0 %654 }
 0x1a1   : > { %v484_v21 = vsel %vm479_vm3, %v474_v46, %v1752_v8 }
 0x1a4   : > { %v537_v35 = vpop.permute.xlu1 %536  ;;  %v661_v11 = vpop.permute.xlu0 %660 }
 0x1a5   : > { %v545_v2 = vsel %vm540_vm4, %v537_v35, %v1755_v16  ;;  %v542_v45 = vsel %vm540_vm4, %v1755_v16, %v537_v35  ;;  %v481_v16 = vsel %vm479_vm3, %v1752_v8, %v474_v46  ;;  %v754_v46 = vsel %vm750_vm6, %v745_v25, %v1722_v48 }
 0x1a6   : > { %v561_v35 = vmul.f32 %v1613_v5, %v545_v2  ;;  %v1920_v48 = vrot.slane %v1219_v9, %v1765_v29 }
 0x1a8   : > { %v599_v17 = vpop.permute.xlu1 %598  ;;  %v1853_v49 = vpop.permute.xlu0 %475  ;;  %v580_v25 = vmul.f32 %v1779_v59, %v561_v35  ;;  %v666_v35 = vsel %vm664_vm2, %v655_v0, %v661_v11 }
 0x1a9   : > { %2233 = vst [vmem:[#allocation24_spill] sm:$0xff] %v1853_v49  ;;  %v607_v20 = vsel %vm602_vm5, %v599_v17, %v1784_v4  ;;  %v604_v44 = vsel %vm602_vm5, %v1784_v4, %v599_v17  ;;  %v562_v49 = vmul.f32 %v1613_v5, %v542_v45  ;;  %v1908_v4 = vrot.slane %v1218_v26, %v1765_v29 }
 0x1aa   : > { %v506_v17 = vmul.f32 %v1708_v41, %v484_v21  ;;  %v623_v2 = vmul.f32 %v1557_v27, %v607_v20  ;;  %v507_v5 = vmul.f32 %v1708_v41, %v481_v16  ;;  %v624_v45 = vmul.f32 %v1557_v27, %v604_v44  ;;  %v1220_v20 = vld [vmem:[%s2191_s7 + $0x10] ss:$8 sm:$0x3] }
 0x1ab   : > { %v813_v27 = vsel %vm812_vm7, %v1731_v56, %v807_v36  ;;  %v581_v41 = vmul.f32 %v1782_v62, %v562_v49  ;;  %v816_v44 = vsel %vm812_vm7, %v807_v36, %v1731_v56  ;;  %v1949_v49 = vrot.slane %v1220_v20, %v1763_v23 }
 0x1ac   : > { %v1845_v51 = vpop.permute.xlu1 %746  ;;  %v1902_v8 = vpop.permute.xlu0 %538  ;;  %v524_v16 = vmul.f32 %v1776_v57, %v506_v17  ;;  %v831_v36 = vmul.f32 %v1685_v33, %v813_v27 }
 0x1b0   : > { %v1847_v42 = vpop.permute.xlu1 %808  ;;  %v931_v62 = vpop.permute.xlu0 %930 }
 0x1b4   : > { %v1849_v60 = vpop.permute.xlu1 %870 }
 0x1b8   : > { %v1851_v31 = vpop.permute.xlu1 %469 }
 0x1b9   : > { %2232 = vst [vmem:[#allocation23_spill] sm:$0xff] %v1851_v31  ;;  %v1899_v31 = vrot.slane %v1218_v26, %v1763_v23  ;;  %v770_v26 = vmul.f32 %v1651_v19, %v754_v46  ;;  %v525_v46 = vmul.f32 %v1787_v10, %v507_v5  ;;  %v878_v5 = vsel %vm874_vm8, %v869_v14, %v1737_v61 }
 0x1bc   : > { %v1858_v18 = vpop.permute.xlu1 %532 }
 0x1bd   : > { %2234 = vst [vmem:[#allocation25_spill] sm:$0xff] %v1858_v18  ;;  %v769_v18 = vmul.f32 %v1651_v19, %v751_v24  ;;  %v642_v19 = vmul.f32 %v1810_v39, %v623_v2  ;;  %v875_v24 = vsel %vm874_vm8, %v1737_v61, %v869_v14  ;;  %v832_v2 = vmul.f32 %v1685_v33, %v816_v44 }
 0x1be   : > { %v1968_v33 = vrot.slane %v1220_v20, %v1765_v29  ;;  %v850_v14 = vmul.f32 %v1899_v31, %v831_v36  ;;  %v752_v29 = vsel %vm750_vm6, %v1815_v37, %v1845_v51 }
 0x1bf   : > { %v788_v56 = vmul.f32 %v1871_v3, %v769_v18  ;;  %v893_v18 = vmul.f32 %v1700_v38, %v875_v24  ;;  %v814_v24 = vsel %vm812_vm7, %v1829_v63, %v1847_v42 }
 0x1c0   : > { %v1892_v28 = vpop.permute.xlu1 %594 }
 0x1c1   : > { %2235 = vst [vmem:[#allocation26_spill] sm:$0xff] %v1892_v28  ;;  %v1914_v28 = vrot.slane %v1219_v9, %v1763_v23  ;;  %v669_v9 = vsel %vm664_vm2, %v661_v11, %v655_v0  ;;  %v586_v11 = vadd.f32 %v580_v25, %v524_v16  ;;  %v587_v23 = vadd.f32 %v581_v41, %v525_v46 }
 0x1c2   : > { %v685_v0 = vmul.f32 %v1632_v13, %v669_v9  ;;  %v937_v25 = vsel %vm936_vm9, %v1750_v6, %v931_v62  ;;  %v794_v27 = vadd.f32 %v788_v56, %v1839_v1  ;;  %v851_v1 = vmul.f32 %v1908_v4, %v832_v2 }
 0x1c3   : > { %v648_v39 = vadd.f32 %v642_v19, %v586_v11  ;;  %v771_v19 = vmul.f32 %v1677_v30, %v752_v29 }
 0x1c4   : > { %v1927_v21 = vpop.permute.xlu1 %656  ;;  %v704_v41 = vmul.f32 %v1802_v54, %v685_v0  ;;  %v856_v16 = vadd.f32 %v850_v14, %v794_v27 }
 0x1c5   : > { %2236 = vst [vmem:[#allocation27_spill] sm:$0xff] %v1927_v21  ;;  %v643_v21 = vmul.f32 %v1813_v47, %v624_v45  ;;  %v686_v45 = vmul.f32 %v1632_v13, %v666_v35  ;;  %v789_v47 = vmul.f32 %v1880_v15, %v770_v26  ;;  %v940_v13 = vsel %vm936_vm9, %v931_v62, %v1750_v6 }
 0x1c6   : > { %v894_v26 = vmul.f32 %v1700_v38, %v878_v5  ;;  %v955_v6 = vmul.f32 %v1706_v40, %v937_v25  ;;  %v912_v62 = vmul.f32 %v1914_v28, %v893_v18  ;;  %v755_v38 = vsel %vm750_vm6, %v1845_v51, %v1815_v37 }
 0x1c7   : > { %v649_v9 = vadd.f32 %v643_v21, %v587_v23  ;;  %v795_v61 = vadd.f32 %v789_v47, %v1841_v32  ;;  %v705_v21 = vmul.f32 %v1805_v50, %v686_v45  ;;  %v710_v47 = vadd.f32 %v704_v41, %v648_v39 }
 0x1c8   : > { %v1954_v17 = vpop.permute.xlu1 %742  ;;  %v956_v32 = vmul.f32 %v1706_v40, %v940_v13  ;;  %v913_v35 = vmul.f32 %v1920_v48, %v894_v26  ;;  %v729_v39 = vmul.f32 %v1571_v55, %v1618_v7  ;;  %v772_v46 = vmul.f32 %v1677_v30, %v755_v38 }
 0x1c9   : > { %v711_v20 = vadd.f32 %v705_v21, %v649_v9  ;;  %v974_v37 = vmul.f32 %v1949_v49, %v955_v6  ;;  %v817_v40 = vsel %vm812_vm7, %v1847_v42, %v1829_v63  ;;  %v857_v51 = vadd.f32 %v851_v1, %v795_v61  ;;  %v992_v63 = vpop.permute.xlu0 %991 }
 0x1ca   : > { %v734_v56 = vadd.f32 %v1578_v58, %v710_v47  ;;  %v975_v36 = vmul.f32 %v1968_v33, %v956_v32  ;;  %v918_v0 = vadd.f32 %v912_v62, %v856_v16  ;;  %v833_v5 = vmul.f32 %v1667_v22, %v814_v24 }
 0x1cb   : > { %v735_v2 = vadd.f32 %v729_v39, %v711_v20  ;;  %v876_v55 = vsel %vm874_vm8, %v1837_v53, %v1849_v60  ;;  %v879_v7 = vsel %vm874_vm8, %v1849_v60, %v1837_v53  ;;  %v790_v30 = vmul.f32 %v1871_v3, %v771_v19 }
 0x1cc   : > { %v1977_v44 = vpop.permute.xlu1 %804  ;;  %v834_v58 = vmul.f32 %v1667_v22, %v817_v40  ;;  %v919_v42 = vadd.f32 %v913_v35, %v857_v51  ;;  %v791_v45 = vmul.f32 %v1880_v15, %v772_v46  ;;  %v980_v23 = vadd.f32 %v974_v37, %v918_v0 }
 0x1cd   : > { %v895_v27 = vmul.f32 %v1687_v34, %v876_v55  ;;  %v896_v53 = vmul.f32 %v1687_v34, %v879_v7  ;;  %v796_v9 = vadd.f32 %v790_v30, %v734_v56  ;;  %v852_v13 = vmul.f32 %v1899_v31, %v833_v5 }
 0x1ce   : > { %v981_v60 = vadd.f32 %v975_v36, %v919_v42  ;;  %v797_v22 = vadd.f32 %v791_v45, %v735_v2  ;;  %v1004_v61 = vadd.f32 %v992_v63, %v980_v23  ;;  %v853_v14 = vmul.f32 %v1908_v4, %v834_v58  ;;  %v2237_v2 = vld [vmem:[#allocation25_spill] sm:$0xff]  ;;  %v2238_v45 = vld [vmem:[#allocation24_spill] sm:$0xff]  ;;  %v2239_v23 = vld [vmem:[#allocation23_spill] sm:$0xff] }
 0x1cf   : > { %v914_v21 = vmul.f32 %v1914_v28, %v895_v27  ;;  %v858_v29 = vadd.f32 %v852_v13, %v796_v9  ;;  %v543_v5 = vsel %vm540_vm4, %v2237_v2, %v1902_v8  ;;  %v546_v7 = vsel %vm540_vm4, %v1902_v8, %v2237_v2 }
 0x1d0   : > { %v933_v11 = vpop.permute.xlu1 %932  ;;  %v1005_v26 = vadd.f32 %v992_v63, %v981_v60  ;;  %v1010_v6 = vadd.f32 3.0, %v1004_v61  ;;  %v859_v34 = vadd.f32 %v853_v14, %v797_v22  ;;  %v2240_v60 = vld [vmem:[#allocation5_spill] sm:$0xff] }
 0x1d1   : > { %v938_v18 = vsel %vm936_vm9, %v1843_v12, %v933_v11  ;;  %v941_v25 = vsel %vm936_vm9, %v933_v11, %v1843_v12  ;;  %v915_v12 = vmul.f32 %v1920_v48, %v896_v53  ;;  %v920_v32 = vadd.f32 %v914_v21, %v858_v29  ;;  %v2242_v29 = vld [vmem:[#allocation26_spill] sm:$0xff] }
 0x1d2   : > { %v957_v41 = vmul.f32 %v1714_v43, %v938_v18  ;;  %v958_v1 = vmul.f32 %v1714_v43, %v941_v25  ;;  %v1011_v62 = vadd.f32 3.0, %v1005_v26  ;;  %v1016_v16 = vmax.f32 %v1010_v6, 0.0 }
 0x1d3   : > { %v921_v20 = vadd.f32 %v915_v12, %v859_v34  ;;  %v482_v18 = vsel %vm479_vm3, %v2239_v23, %v2238_v45  ;;  %v485_v25 = vsel %vm479_vm3, %v2238_v45, %v2239_v23  ;;  %v563_v9 = vmul.f32 %v2240_v60, %v546_v7  ;;  %v2249_v45 = vld [vmem:[#allocation11_spill] sm:$0xff]  ;;  %v2250_v23 = vld [vmem:[#allocation12_spill] sm:$0xff] }
 0x1d4   : > { %v976_v47 = vmul.f32 %v1949_v49, %v957_v41  ;;  %v977_v38 = vmul.f32 %v1968_v33, %v958_v1  ;;  %v1017_v35 = vmax.f32 %v1011_v62, 0.0  ;;  %v1022_v37 = vmin.f32 %v1016_v16, 6.0 }
 0x1d5   : > { %v564_v8 = vmul.f32 %v2240_v60, %v543_v5 }
 0x1d6   : > { %v982_v19 = vadd.f32 %v976_v47, %v920_v32  ;;  %v983_v24 = vadd.f32 %v977_v38, %v921_v20  ;;  %v1023_v40 = vmin.f32 %v1017_v35, 6.0  ;;  %v1028_v55 = vmul.f32 %v1022_v37, %v1004_v61  ;;  %v2243_v38 = vld [vmem:[#allocation20_spill] sm:$0xff]  ;;  %v2246_v37 = vld [vmem:[#allocation22_spill] sm:$0xff] }
 0x1d7   : > { %v582_v47 = vmul.f32 %v1779_v59, %v563_v9  ;;  %v583_v32 = vmul.f32 %v2243_v38, %v564_v8  ;;  %v2244_v20 = vld [vmem:[#allocation8_spill] sm:$0xff] }
 0x1d8   : > { %v1029_v30 = vmul.f32 %v1023_v40, %v1005_v26  ;;  %v1034_v22 = vmul.f32 0.16666667, %v1028_v55  ;;  %v2241_v26 = vld [vmem:[#allocation17_spill] sm:$0xff] }
 0x1d9   : > { %v508_v41 = vmul.f32 %v2241_v26, %v485_v25  ;;  %v509_v1 = vmul.f32 %v2241_v26, %v482_v18  ;;  %v730_v18 = vmul.f32 %v2250_v23, %v2249_v45  ;;  %v2251_v25 = vld [vmem:[#allocation9_spill] sm:$0xff] }
 0x1da   : > { %v1035_v13 = vmul.f32 0.16666667, %v1029_v30 }
 0x1e1   : > { %v997_v39 = vpop.permute.xlu1 %996 }
 0x1e2   : > { %v1006_v43 = vadd.f32 %v997_v39, %v982_v19  ;;  %v1007_v46 = vadd.f32 %v997_v39, %v983_v24  ;;  %v526_v19 = vmul.f32 %v1776_v57, %v508_v41  ;;  %v527_v24 = vmul.f32 %v1787_v10, %v509_v1  ;;  %v873_v39 = vpop.permute.xlu0 %872  ;;  %v2248_v57 = vld [vmem:[#allocation10_spill] sm:$0xff] }
 0x1e4   : > { %v1012_v51 = vadd.f32 3.0, %v1006_v43  ;;  %v1013_v56 = vadd.f32 3.0, %v1007_v46  ;;  %v589_v2 = vadd.f32 %v583_v32, %v527_v24 }
 0x1e5   : > { %v867_v36 = vpop.permute.xlu1 %866 }
 0x1e6   : > { %v1018_v0 = vmax.f32 %v1012_v51, 0.0  ;;  %v1019_v11 = vmax.f32 %v1013_v56, 0.0  ;;  %v2247_v56 = vld [vmem:[#allocation27_spill] sm:$0xff]  ;;  %v935_v9 = vpop.permute.xlu0 %934 }
 0x1e8   : > { %v1024_v58 = vmin.f32 %v1018_v0, 6.0  ;;  %v1025_v63 = vmin.f32 %v1019_v11, 6.0  ;;  %v588_v11 = vadd.f32 %v582_v47, %v526_v19 }
 0x1e9   : > { %v929_v42 = vpop.permute.xlu1 %928 }
 0x1ea   : > { %v1030_v27 = vmul.f32 %v1024_v58, %v1006_v43  ;;  %v1031_v53 = vmul.f32 %v1025_v63, %v1007_v46  ;;  %v2245_v43 = vld [vmem:[#allocation21_spill] sm:$0xff]  ;;  %v939_v26 = vsel %vm936_vm9, %v929_v42, %v935_v9  ;;  %v942_v41 = vsel %vm936_vm9, %v935_v9, %v929_v42  ;;  %v337_v45 = vpop.permute.xlu0 %336 }
 0x1eb   : > { %v2254_v42 = vld [vmem:[#allocation13_spill] sm:$0xff] }
 0x1ec   : > { %v1036_v61 = vmul.f32 0.16666667, %v1030_v27  ;;  %v1037_v14 = vmul.f32 0.16666667, %v1031_v53  ;;  %v731_v27 = vmul.f32 %v2250_v23, %v2251_v25 }
 0x1ed   : > { %v601_v21 = vpop.permute.xlu1 %600 }
 0x1ee   : > { %v1042_v12 = vpack.c.bf16 %v1036_v61, %v1034_v22  ;;  %v605_v6 = vsel %vm602_vm5, %v2242_v29, %v601_v21  ;;  %v608_v34 = vsel %vm602_vm5, %v601_v21, %v2242_v29  ;;  %v1043_v62 = vpack.c.bf16 %v1037_v14, %v1035_v13  ;;  %v2252_v22 = vld [vmem:[#allocation14_spill] sm:$0xff] }
 0x1ef   : > { %v625_v16 = vmul.f32 %v2244_v20, %v608_v34  ;;  %v626_v35 = vmul.f32 %v2244_v20, %v605_v6  ;;  %v877_v61 = vsel %vm874_vm8, %v867_v36, %v873_v39  ;;  %v880_v14 = vsel %vm874_vm8, %v873_v39, %v867_v36  ;;  %v2253_v34 = vld [vmem:[#allocation15_spill] sm:$0xff] }
 0x1f0   : > { %1073 = vmatprep.subr.bf16.mxu1 %v1043_v62  ;;  %v897_v62 = vmul.f32 %v2253_v34, %v877_v61  ;;  %v898_v47 = vmul.f32 %v2253_v34, %v880_v14  ;;  %v2258_v61 = vld [vmem:[#allocation18_spill] sm:$0xff] }
 0x1f1   : > { %v644_v46 = vmul.f32 %v2245_v43, %v625_v16  ;;  %v645_v40 = vmul.f32 %v2246_v37, %v626_v35  ;;  %v663_v51 = vpop.permute.xlu1 %662  ;;  %1074 = vmatpush1.bf16.msra.mxu1 %v1042_v12 }
 0x1f2   : > { %v667_v59 = vsel %vm664_vm2, %v2247_v56, %v663_v51  ;;  %v670_v0 = vsel %vm664_vm2, %v663_v51, %v2247_v56  ;;  %v916_v52 = vmul.f32 %v1914_v28, %v897_v62 }
 0x1f3   : > { %v687_v5 = vmul.f32 %v2248_v57, %v670_v0  ;;  %v688_v10 = vmul.f32 %v2248_v57, %v667_v59  ;;  %v650_v55 = vadd.f32 %v644_v46, %v588_v11  ;;  %v651_v7 = vadd.f32 %v645_v40, %v589_v2 }
 0x1f5   : > { %v706_v30 = vmul.f32 %v1802_v54, %v687_v5  ;;  %v707_v58 = vmul.f32 %v1805_v50, %v688_v10  ;;  %v749_v63 = vpop.permute.xlu1 %748 }
 0x1f6   : > { %v753_v53 = vsel %vm750_vm6, %v1954_v17, %v749_v63  ;;  %v756_v60 = vsel %vm750_vm6, %v749_v63, %v1954_v17  ;;  %v1315_v63 = vld [vmem:[%s2189_s5] sm:$0xff]  }
 0x1f7   : > { %v712_v8 = vadd.f32 %v706_v30, %v650_v55  ;;  %v713_v54 = vadd.f32 %v707_v58, %v651_v7  ;;  %v773_v50 = vmul.f32 %v2252_v22, %v753_v53  ;;  %v774_v13 = vmul.f32 %v2252_v22, %v756_v60 }
 0x1f9   : > { %v736_v17 = vadd.f32 %v730_v18, %v712_v8  ;;  %v737_v1 = vadd.f32 %v731_v27, %v713_v54  ;;  %v792_v21 = vmul.f32 %v1871_v3, %v773_v50  ;;  %v793_v12 = vmul.f32 %v1880_v15, %v774_v13  ;;  %v811_v29 = vpop.permute.xlu1 %810  ;;  %v2255_v3 = vld [vmem:[#allocation16_spill] sm:$0xff]  ;;  %v1051_v18 = vpop.permute.xlu0 %1050  ;;  %v2256_v27 = vld [vmem:[#allocation6_spill] sm:$0xff]  ;;  %v2257_v8 = vld [vmem:[#allocation7_spill] sm:$0xff] }
 0x1fa   : > { %v815_v6 = vsel %vm812_vm7, %v1977_v44, %v811_v29  ;;  %v818_v36 = vsel %vm812_vm7, %v811_v29, %v1977_v44  ;;  %v959_v20 = vmul.f32 %v2255_v3, %v939_v26  ;;  %v960_v15 = vmul.f32 %v2255_v3, %v942_v41 }
 0x1fb   : > { %v835_v38 = vmul.f32 %v2254_v42, %v815_v6  ;;  %v836_v32 = vmul.f32 %v2254_v42, %v818_v36  ;;  %v798_v16 = vadd.f32 %v792_v21, %v736_v17  ;;  %v799_v35 = vadd.f32 %v793_v12, %v737_v1  ;;  %v2259_v1 = vld [vmem:[#allocation19_spill] sm:$0xff] }
 0x1fc   : > { %v917_v44 = vmul.f32 %v1920_v48, %v898_v47  ;;  %v978_v46 = vmul.f32 %v1949_v49, %v959_v20  ;;  %v979_v37 = vmul.f32 %v1968_v33, %v960_v15  ;;  %v423_v53 = vadd.f32 %v2256_v27, %v337_v45 }
 0x1fd   : > { %v854_v19 = vmul.f32 %v1899_v31, %v835_v38  ;;  %v855_v24 = vmul.f32 %v1908_v4, %v836_v32  ;;  %v1002_v0 = vpop.permute.xlu1 %1001  ;;  %v425_v54 = vadd.f32 %v2257_v8, %v337_v45 }
 0x1ff   : > { %v860_v39 = vadd.f32 %v854_v19, %v798_v16  ;;  %v861_v43 = vadd.f32 %v855_v24, %v799_v35 }
 0x201   : > { %v922_v40 = vadd.f32 %v916_v52, %v860_v39  ;;  %v923_v51 = vadd.f32 %v917_v44, %v861_v43  ;;  %v342_v23 = vpop.permute.xlu1 %341 }
 0x202   : > { %v429_v14 = vadd.f32 %v2258_v61, %v342_v23  ;;  %v431_v21 = vadd.f32 %v2259_v1, %v342_v23 }
 0x203   : > { %v984_v56 = vadd.f32 %v978_v46, %v922_v40  ;;  %v985_v59 = vadd.f32 %v979_v37, %v923_v51 }
 0x205   : > { %v1008_v11 = vadd.f32 %v1002_v0, %v984_v56  ;;  %v1009_v2 = vadd.f32 %v1002_v0, %v985_v59  ;;  %v1056_v22 = vpop.permute.xlu1 %1055 }
 0x207   : > { %v1014_v31 = vadd.f32 3.0, %v1008_v11  ;;  %v1015_v57 = vadd.f32 3.0, %v1009_v2 }
 0x209   : > { %v1020_v4 = vmax.f32 %v1014_v31, 0.0  ;;  %v1021_v5 = vmax.f32 %v1015_v57, 0.0 }
 0x20b   : > { %v1026_v28 = vmin.f32 %v1020_v4, 6.0  ;;  %v1027_v48 = vmin.f32 %v1021_v5, 6.0 }
 0x20d   : > { %v1032_v10 = vmul.f32 %v1026_v28, %v1008_v11  ;;  %v1033_v55 = vmul.f32 %v1027_v48, %v1009_v2 }
 0x20f   : > { %v1038_v49 = vmul.f32 0.16666667, %v1032_v10  ;;  %v1039_v7 = vmul.f32 0.16666667, %v1033_v55 }
 0x211   : > { %v1044_v33 = vpack.c.bf16 %v1038_v49, %v1038_v49  ;;  %v1045_v30 = vpack.c.bf16 %v1039_v7, %v1039_v7 }
 0x213   : > { %1222 = vmatprep.subr.msk.bf16.mxu1 %vm367_vm0, %v1045_v30  ;;  %v1068_v58 = vsel %vm367_vm0, %v1044_v33, 0 }
 0x214   : > { %1076 = vmatpush1.bf16.msra.mxu1 %v1068_v58 }
 0x217   : > { %1223 = vmatmul.mubr.msk.bf16.vlgmr.msra.gmra.mrb[4].mxu1 %vm1063_vm10, %v1315_v63 }
 0x2ea   : > { %v1107_v25 = vpop.f32.mrb[4].mxu1 }
 0x2eb   : > { %v1108_v60 = vadd.f32 %v1107_v25, %v1051_v18  ;;  %v1109_v9 = vpop.f32.mrb[5].mxu1 }
 0x2ec   : > { %v1110_v50 = vadd.f32 %v1109_v9, %v1051_v18  ;;  %v1111_v13 = vpop.f32.mrb[6].mxu1 }
 0x2ed   : > { %v1116_v26 = vadd.f32 %v1108_v60, %v423_v53  ;;  %v1112_v41 = vadd.f32 %v1111_v13, %v1056_v22  ;;  %v1113_v17 = vpop.f32.mrb[7].mxu1 }
 0x2ee   : > { %v1117_v12 = vadd.f32 %v1110_v50, %v425_v54  ;;  %v1114_v29 = vadd.f32 %v1113_v17, %v1056_v22 }
 0x2ef   : > { %1120 = vst [vmem:[%s298_s13] sm:$0xff] %v1116_v26  ;;  %v1118_v6 = vadd.f32 %v1112_v41, %v429_v14 }
 0x2f0   : > { %1121 = vst [vmem:[%s298_s13 + $0x8] sm:$0xff] %v1117_v12  ;;  %v1119_v36 = vadd.f32 %v1114_v29, %v431_v21 }
 0x2f1   : > { %1122 = vst [vmem:[%s298_s13 + $0x10] sm:$0xff] %v1118_v6 }
 0x2f2   : > { %1123 = vst [vmem:[%s298_s13 + $0x18] sm:$0xff] %v1119_v36 }
 0x2f3   : > { %1329 = shalt.err (!%p1326_p3)
}
 0x2f4   : > { %s1330_s17 = scalar_lea.hbm %s2138_s25, 512  ;;  %s1334_s18 = scalar_lea.hbm %s2192_s8, 1024 }
 0x2f5   : > { %p1331_p4 = scmp.ne.s32.totalorder %s2138_s25, %s1330_s17  ;;  %p1335_p9 = scmp.lt.u32.totalorder %s2138_s25, %s2192_s8 }
 0x2f6   : > { %p1336_p10 = scmp.lt.u32.totalorder %s1334_s18, %s1330_s17  ;;  %p1338_p12 = scmp.lt.u32.totalorder %s1330_s17, %s2138_s25 }
 0x2f7   : > { %p1332_p7 = pnand %p1331_p4, %p1482_p5 }
 0x2f8   : > { %p1337_p11 = por %p1336_p10, %p1335_p9 }
 0x2f9   : > { %p1333_p8 = pneg %p1332_p7 }
 0x2fa   : > { %p1339_p13 = por %p1338_p12, %p1337_p11 }
 0x2fc   : > { %p1340_p0 = pnand %p1339_p13, %p1333_p8 }
 0x2fe   : > { %1343 = shalt.err (!%p1340_p0)
}
 0x2ff   : > { %s1398_s26 = smov 256  }
 0x300   : > { %1233 = dma.vmem_to_hbm [thread:$0]  (%p1482_p5), %s2133_s19, 512, %s2138_s25, %s2142_s9, %s1398_s26, %s1398_s26, %s1389_s10  }
 0x301 PF: > { %p1239_p1 = scmp.ge.s32.totalorder %s1378_s30, 2  ;;  %s1153_s22 = sand.u32 1, %s1366_s27  }
 0x302   : > { %s1154_s12 = scalar_lea.sflag [#allocation3], %s1153_s22 }
 0x303   : > { %p1236_p2 = pnand %p1239_p1, %p1486_p6 }
 0x305   : > { %1361 = dma.done.wait (!%p1236_p2), %s1154_s12, 512  }
 0x306   : > { %1363 = vsyncadd (!%p1236_p2), %s1154_s12, 4294966784  ;;  %p18_p3 = scmp.ge.s32.totalorder %s1469_s11, 4   ;;  %s2260_s27 = smov %s1370_s28 }
 0x307   : > { %s2261_s28 = smov %s1374_s29  ;;  %s2262_s29 = smov %s1480_s14 }
 0x308   : > { %s2263_s30 = smov %s1469_s11  ;;  %20 = sbr.rel (!%p18_p3) target bundleno = 3 (0x3), region = 94 }
 0x30f   :  { %1159 = vsyncpa [#allocation3], 1 }
 0x310   :  { %1161 = vsyncpa [#allocation3 + $0x1], 1 }

</bundles_post_ra>
